<compile_context>
chip_gen: v6e
topology: v6e:2x2x1
jax: 0.10.0
libtpu: 0.0.40
codegen_flags: <defaults>
</compile_context>

<pallas_src>
import functools

import jax
import jax.numpy as jnp
from jax.experimental import pallas as pl
from jax.experimental.pallas import tpu as pltpu

BN_EPS = 1e-5


# ----------------------------------------------------------------------------
# Kernel factory (closes over the static dimensions)
# ----------------------------------------------------------------------------
def _make_kernel(B, HW, prev_dim, dim, pred_dim):
    inv_hw = 1.0 / float(HW)

    def bn(h, gamma=None, beta=None):
        """PyTorch BatchNorm1d, training mode, computed PER VIEW.

        h: [2B, d]; rows [0:B] are view 1, rows [B:2B] are view 2.  Folded into one
        scale/shift (h * scale + shift).  The [2B, d] <-> [2, B, d] reshape is
        sublane-tile aligned when B is a multiple of 8.
        """
        d = h.shape[-1]
        h2 = h.reshape(2, B, d)
        mean = jnp.mean(h2, axis=1, keepdims=True)
        var = jnp.mean(jnp.square(h2 - mean), axis=1, keepdims=True)
        scale = jax.lax.rsqrt(var + BN_EPS)                    # EUP
        if gamma is not None:
            scale = scale * gamma[None]                        # [2,1,d]
            shift = beta[None] - mean * scale
        else:
            shift = -(mean * scale)
        return (h2 * scale + shift).reshape(2 * B, d)

    def mxu(a, w_ref):
        # bf16 x bf16 -> f32 accumulate: single MXU pass on v5e/v6e/v7x.
        return jnp.dot(a.astype(jnp.bfloat16), w_ref[...],
                       preferred_element_type=jnp.float32)

    def kernel(x1_ref, x2_ref, bw_ref, pw1_ref, pw2_ref, pw3_ref,
               qw1_ref, qw2_ref, bnp_ref, zp_ref, acc_ref):
        k = pl.program_id(0)

        # ---- streamed global average pool: accumulate per-chunk partial sums
        @pl.when(k == 0)
        def _():
            acc_ref[...] = jnp.zeros_like(acc_ref)

        acc_ref[0:B, :] += jnp.sum(x1_ref[...].astype(jnp.float32), axis=-1)
        acc_ref[B:2 * B, :] += jnp.sum(x2_ref[...].astype(jnp.float32), axis=-1)

        # ---- last chunk: run the whole (tiny, VMEM-resident) network once
        @pl.when(k == pl.num_programs(0) - 1)
        def _():
            bnp = bnp_ref[...]                                  # [8, maxd] f32
            g1, b1 = bnp[0:1, :prev_dim], bnp[1:2, :prev_dim]
            g2, b2 = bnp[2:3, :prev_dim], bnp[3:4, :prev_dim]
            qg1, qb1 = bnp[4:5, :pred_dim], bnp[5:6, :pred_dim]
            qb2 = bnp[6:7, :dim]

            feat = acc_ref[...] * inv_hw                        # [2B, C]

            # synthetic encoder backbone head: Linear(C -> prev_dim), no bias
            h = mxu(feat, bw_ref)                               # [2B, prev_dim]

            # projector (encoder.fc): (Linear + BN + ReLU) x2, Linear, BN(affine=False)
            h = jnp.maximum(bn(mxu(h, pw1_ref), g1, b1), 0.0)
            h = jnp.maximum(bn(mxu(h, pw2_ref), g2, b2), 0.0)
            # layer-3 bias skipped: the affine-free batch-stat BN cancels it exactly.
            z = bn(mxu(h, pw3_ref))                             # [2B, dim]

            # predictor: Linear(no bias) + BN + ReLU, Linear(with bias)
            h = jnp.maximum(bn(mxu(z, qw1_ref), qg1, qb1), 0.0)
            p = mxu(h, qw2_ref) + qb2                           # [2B, dim]

            # lane-dense [2B, 2*dim] output block (z | p)
            zp_ref[:, 0:dim] = z.astype(zp_ref.dtype)
            zp_ref[:, dim:2 * dim] = p.astype(zp_ref.dtype)

    return kernel


# ----------------------------------------------------------------------------
# Parameters (Linear weights stored bf16; BN / bias vectors f32)
# ----------------------------------------------------------------------------
def init_params(key, in_channels, prev_dim, dim, pred_dim):
    ks = jax.random.split(key, 14)
    s = 0.05

    def lin(k, fi, fo):
        return (jax.random.normal(k, (fi, fo), jnp.float32) * s).astype(jnp.bfloat16)

    def gamma(k, d):
        return 1.0 + 0.1 * jax.random.normal(k, (d,), jnp.float32)

    def beta(k, d):
        return 0.1 * jax.random.normal(k, (d,), jnp.float32)

    return {
        # synthetic backbone head: Linear(C -> prev_dim), no bias
        "backbone_w": lin(ks[0], in_channels, prev_dim),
        # encoder.fc (projector)
        "proj_w1": lin(ks[1], prev_dim, prev_dim),
        "proj_bn1_g": gamma(ks[2], prev_dim), "proj_bn1_b": beta(ks[3], prev_dim),
        "proj_w2": lin(ks[4], prev_dim, prev_dim),
        "proj_bn2_g": gamma(ks[5], prev_dim), "proj_bn2_b": beta(ks[6], prev_dim),
        "proj_w3": lin(ks[7], prev_dim, dim),                   # original encoder.fc
        # Kept for state-dict parity; forward no-op (cancelled by affine-free BN).
        "proj_b3": jax.random.normal(ks[8], (dim,), jnp.float32) * s,
        # predictor
        "pred_w1": lin(ks[9], dim, pred_dim),
        "pred_bn1_g": gamma(ks[10], pred_dim), "pred_bn1_b": beta(ks[11], pred_dim),
        "pred_w2": lin(ks[12], pred_dim, dim),
        "pred_b2": jax.random.normal(ks[13], (dim,), jnp.float32) * s,
    }


# ----------------------------------------------------------------------------
# Forward: one pallas_call, grid over HW chunks (streamed GAP)
# ----------------------------------------------------------------------------
def simsiam_forward(params, x1, x2, *, max_hw_chunk=2048):
    B, C, H, W = x1.shape
    HW = H * W
    prev_dim = params["backbone_w"].shape[1]
    dim = params["proj_w3"].shape[1]
    pred_dim = params["pred_w1"].shape[1]

    # HW chunk: multiple of 128 lanes that divides HW, capped by max_hw_chunk so the
    # double-buffered x blocks stay well under the scoped VMEM limit on all chips.
    if HW % 128 == 0:
        hw_chunk = min(HW, max(128, (max_hw_chunk // 128) * 128))
        while HW % hw_chunk:
            hw_chunk -= 128
    else:
        hw_chunk = HW
    n_chunks = HW // hw_chunk

    x1f = x1.reshape(B, C, HW)
    x2f = x2.reshape(B, C, HW)

    # Pack the 7 tiny per-feature vectors into one (8, maxd) operand.
    maxd = max(prev_dim, pred_dim, dim)

    def row(v):
        v = v.reshape(-1).astype(jnp.float32)
        return jnp.pad(v, (0, maxd - v.shape[0]))

    bn_pack = jnp.stack([
        row(params["proj_bn1_g"]), row(params["proj_bn1_b"]),
        row(params["proj_bn2_g"]), row(params["proj_bn2_b"]),
        row(params["pred_bn1_g"]), row(params["pred_bn1_b"]),
        row(params["pred_b2"]), jnp.zeros((maxd,), jnp.float32)], axis=0)

    def full(shape):
        return pl.BlockSpec(shape, lambda k: (0,) * len(shape))

    kernel = _make_kernel(B, HW, prev_dim, dim, pred_dim)

    zp = pl.pallas_call(
        kernel,
        out_shape=jax.ShapeDtypeStruct((2 * B, 2 * dim), jnp.float32),
        grid=(n_chunks,),
        in_specs=[
            pl.BlockSpec((B, C, hw_chunk), lambda k: (0, 0, k)),   # x1 chunk (streamed)
            pl.BlockSpec((B, C, hw_chunk), lambda k: (0, 0, k)),   # x2 chunk (streamed)
            full((C, prev_dim)),                                   # backbone_w  (bf16)
            full((prev_dim, prev_dim)),                            # proj_w1     (bf16)
            full((prev_dim, prev_dim)),                            # proj_w2     (bf16)
            full((prev_dim, dim)),                                 # proj_w3     (bf16)
            full((dim, pred_dim)),                                 # pred_w1     (bf16)
            full((pred_dim, dim)),                                 # pred_w2     (bf16)
            full((8, maxd)),                                       # packed BN params
        ],
        out_specs=pl.BlockSpec((2 * B, 2 * dim), lambda k: (0, 0)),
        scratch_shapes=[pltpu.VMEM((2 * B, C), jnp.float32)],      # GAP accumulator
        compiler_params=pltpu.CompilerParams(
            dimension_semantics=("arbitrary",),                    # carries accumulator
            vmem_limit_bytes=32 * 1024 * 1024),
    )(x1f, x2f,
      params["backbone_w"], params["proj_w1"], params["proj_w2"],
      params["proj_w3"], params["pred_w1"], params["pred_w2"], bn_pack)

    z, p = zp[:, :dim], zp[:, dim:]
    z1, z2 = z[:B], z[B:]
    p1, p2 = p[:B], p[B:]
    # TODO(synk): generator branch (self.G=True) needs random.uniform + an external
    # Generator module not defined in the reference file; only the G=False path here.
    return p1, p2, jax.lax.stop_gradient(z1), jax.lax.stop_gradient(z2)


# ----------------------------------------------------------------------------
# Pure-JAX reference (correctness check only)
# ----------------------------------------------------------------------------
def _reference_forward(params, x1, x2):
    def bn(h, g=None, b=None):
        mean = jnp.mean(h, axis=0, keepdims=True)
        var = jnp.mean((h - mean) ** 2, axis=0, keepdims=True)
        h = (h - mean) * jax.lax.rsqrt(var + BN_EPS)
        if g is not None:
            h = h * g + b
        return h

    def dot(a, w):
        # Same bf16 matmul contract as the kernel (bf16 inputs, f32 accumulate).
        return jnp.dot(a.astype(jnp.bfloat16), w.astype(jnp.bfloat16),
                       precision=jax.lax.Precision.HIGHEST,
                       preferred_element_type=jnp.float32)

    def encoder(x):
        B, C, H, W = x.shape
        feat = jnp.mean(x.reshape(B, C, H * W).astype(jnp.float32), axis=-1)
        h = dot(feat, params["backbone_w"])
        h = jnp.maximum(bn(dot(h, params["proj_w1"]),
                           params["proj_bn1_g"], params["proj_bn1_b"]), 0.0)
        h = jnp.maximum(bn(dot(h, params["proj_w2"]),
                           params["proj_bn2_g"], params["proj_bn2_b"]), 0.0)
        # Reference keeps the layer-3 bias: the affine-free batch-stat BN cancels it.
        return bn(dot(h, params["proj_w3"]) + params["proj_b3"])

    def predictor(z):
        h = jnp.maximum(bn(dot(z, params["pred_w1"]),
                           params["pred_bn1_g"], params["pred_bn1_b"]), 0.0)
        return dot(h, params["pred_w2"]) + params["pred_b2"]

    z1, z2 = encoder(x1), encoder(x2)
    return predictor(z1), predictor(z2), z1, z2


if __name__ == "__main__":
    # Small shapes consistent with the forward: B=8, C=4, H=W=16,
    # prev_dim=32 (encoder feature dim), dim=64, pred_dim=16.
    B, C, H, W = 8, 4, 16, 16
    prev_dim, dim, pred_dim = 32, 64, 16

    key = jax.random.PRNGKey(0)
    k_params, k_x1, k_x2 = jax.random.split(key, 3)
    params = init_params(k_params, C, prev_dim, dim, pred_dim)

    x1 = jax.random.normal(k_x1, (B, C, H, W), jnp.float32)
    x2 = jax.random.normal(k_x2, (B, C, H, W), jnp.float32)

    # max_hw_chunk=128 forces 2 streamed GAP chunks at HW=256 (exercises the pipeline).
    fwd = jax.jit(functools.partial(simsiam_forward, max_hw_chunk=128))
    p1, p2, z1, z2 = fwd(params, x1, x2)
    jax.block_until_ready((p1, p2, z1, z2))

    assert p1.shape == (B, dim) and p2.shape == (B, dim)
    assert z1.shape == (B, dim) and z2.shape == (B, dim)
    assert jnp.all(jnp.isfinite(p1)) and jnp.all(jnp.isfinite(p2))
    assert jnp.all(jnp.isfinite(z1)) and jnp.all(jnp.isfinite(z2))

    rp1, rp2, rz1, rz2 = _reference_forward(params, x1, x2)
    # Tolerance covers bf16 matmul inputs + chunked-GAP / folded-BN rounding order.
    for got, want in ((p1, rp1), (p2, rp2), (z1, rz1), (z2, rz2)):
        assert jnp.allclose(got, want, rtol=1e-2, atol=2e-3), \
            float(jnp.max(jnp.abs(got - want)))

    print("KERNEL_OK")
</pallas_src>

<mosaic_0001>
module attributes {stable_mosaic.version = 11 : i64} {
  func.func @kernel(%arg0: i32, %arg1: memref<8x4x128xf32, #tpu.memory_space<vmem>>, %arg2: memref<8x4x128xf32, #tpu.memory_space<vmem>>, %arg3: memref<4x32xbf16, #tpu.memory_space<vmem>>, %arg4: memref<32x32xbf16, #tpu.memory_space<vmem>>, %arg5: memref<32x32xbf16, #tpu.memory_space<vmem>>, %arg6: memref<32x64xbf16, #tpu.memory_space<vmem>>, %arg7: memref<64x16xbf16, #tpu.memory_space<vmem>>, %arg8: memref<16x64xbf16, #tpu.memory_space<vmem>>, %arg9: memref<8x64xf32, #tpu.memory_space<vmem>>, %arg10: memref<16x128xf32, #tpu.memory_space<vmem>>, %arg11: memref<16x4xf32, #tpu.memory_space<vmem>>) attributes {dimension_semantics = [#tpu.dimension_semantics<arbitrary>], iteration_bounds = array<i64: 2>, scalar_prefetch = 0 : i64, scratch_operands = 1 : i64, tpu.core_type = #tpu.core_type<tc>, window_params = [{transform_indices = @transform_0, window_bounds = array<i64: 8, 4, 128>}, {transform_indices = @transform_1, window_bounds = array<i64: 8, 4, 128>}, {pipeline_mode = #tpu.pipeline_mode<synchronous>, transform_indices = @transform_2, window_bounds = array<i64: 4, 32>}, {pipeline_mode = #tpu.pipeline_mode<synchronous>, transform_indices = @transform_3, window_bounds = array<i64: 32, 32>}, {pipeline_mode = #tpu.pipeline_mode<synchronous>, transform_indices = @transform_4, window_bounds = array<i64: 32, 32>}, {pipeline_mode = #tpu.pipeline_mode<synchronous>, transform_indices = @transform_5, window_bounds = array<i64: 32, 64>}, {pipeline_mode = #tpu.pipeline_mode<synchronous>, transform_indices = @transform_6, window_bounds = array<i64: 64, 16>}, {pipeline_mode = #tpu.pipeline_mode<synchronous>, transform_indices = @transform_7, window_bounds = array<i64: 16, 64>}, {pipeline_mode = #tpu.pipeline_mode<synchronous>, transform_indices = @transform_8, window_bounds = array<i64: 8, 64>}, {pipeline_mode = #tpu.pipeline_mode<synchronous>, transform_indices = @transform_9, window_bounds = array<i64: 16, 128>}]} {
    %c0_i32 = arith.constant 0 : i32
    %0 = arith.cmpi eq, %arg0, %c0_i32 : i32
    %1 = arith.extui %0 : i1 to i32
    %c0_i32_0 = arith.constant 0 : i32
    %2 = arith.cmpi ne, %1, %c0_i32_0 : i32
    scf.if %2 {
      %cst_15 = arith.constant 0.000000e+00 : f32
      %16 = vector.broadcast %cst_15 : f32 to vector<16x4xf32>
      %c0_16 = arith.constant 0 : index
      %c0_17 = arith.constant 0 : index
      %17 = vector.load %arg11[%c0_16, %c0_17] : memref<16x4xf32, #tpu.memory_space<vmem>>, vector<16x4xf32>
      tpu.vector_store %arg11[%c0_16, %c0_17], %16 {strides = array<i32>} : memref<16x4xf32, #tpu.memory_space<vmem>>, vector<16x4xf32>,
    } else {
    }
    %c0 = arith.constant 0 : index
    %c0_1 = arith.constant 0 : index
    %3 = vector.load %arg11[%c0, %c0_1] : memref<16x4xf32, #tpu.memory_space<vmem>>, vector<8x4xf32>
    %c0_2 = arith.constant 0 : index
    %c0_3 = arith.constant 0 : index
    %c0_4 = arith.constant 0 : index
    %4 = vector.load %arg1[%c0_2, %c0_3, %c0_4] : memref<8x4x128xf32, #tpu.memory_space<vmem>>, vector<8x4x128xf32>
    %cst = arith.constant dense<0.000000e+00> : vector<8x4xf32>
    %5 = vector.multi_reduction <add>, %4, %cst [2] : vector<8x4x128xf32> to vector<8x4xf32>
    %6 = arith.addf %3, %5 : vector<8x4xf32>
    %c0_5 = arith.constant 0 : index
    %c0_6 = arith.constant 0 : index
    %7 = vector.load %arg11[%c0_5, %c0_6] : memref<16x4xf32, #tpu.memory_space<vmem>>, vector<8x4xf32>
    tpu.vector_store %arg11[%c0_5, %c0_6], %6 {strides = array<i32>} : memref<16x4xf32, #tpu.memory_space<vmem>>, vector<8x4xf32>,
    %c8 = arith.constant 8 : index
    %c0_7 = arith.constant 0 : index
    %8 = vector.load %arg11[%c8, %c0_7] : memref<16x4xf32, #tpu.memory_space<vmem>>, vector<8x4xf32>
    %c0_8 = arith.constant 0 : index
    %c0_9 = arith.constant 0 : index
    %c0_10 = arith.constant 0 : index
    %9 = vector.load %arg2[%c0_8, %c0_9, %c0_10] : memref<8x4x128xf32, #tpu.memory_space<vmem>>, vector<8x4x128xf32>
    %cst_11 = arith.constant dense<0.000000e+00> : vector<8x4xf32>
    %10 = vector.multi_reduction <add>, %9, %cst_11 [2] : vector<8x4x128xf32> to vector<8x4xf32>
    %11 = arith.addf %8, %10 : vector<8x4xf32>
    %c8_12 = arith.constant 8 : index
    %c0_13 = arith.constant 0 : index
    %12 = vector.load %arg11[%c8_12, %c0_13] : memref<16x4xf32, #tpu.memory_space<vmem>>, vector<8x4xf32>
    tpu.vector_store %arg11[%c8_12, %c0_13], %11 {strides = array<i32>} : memref<16x4xf32, #tpu.memory_space<vmem>>, vector<8x4xf32>,
    %c1_i32 = arith.constant 1 : i32
    %13 = arith.cmpi eq, %arg0, %c1_i32 : i32
    %14 = arith.extui %13 : i1 to i32
    %c0_i32_14 = arith.constant 0 : i32
    %15 = arith.cmpi ne, %14, %c0_i32_14 : i32
    scf.if %15 {
      %c0_15 = arith.constant 0 : index
      %c0_16 = arith.constant 0 : index
      %16 = vector.load %arg9[%c0_15, %c0_16] : memref<8x64xf32, #tpu.memory_space<vmem>>, vector<8x64xf32>
      %17 = vector.extract_strided_slice %16 {offsets = [0, 0], sizes = [1, 32], strides = [1, 1]} : vector<8x64xf32> to vector<1x32xf32>
      %18 = vector.extract_strided_slice %16 {offsets = [1, 0], sizes = [1, 32], strides = [1, 1]} : vector<8x64xf32> to vector<1x32xf32>
      %19 = vector.extract_strided_slice %16 {offsets = [2, 0], sizes = [1, 32], strides = [1, 1]} : vector<8x64xf32> to vector<1x32xf32>
      %20 = vector.extract_strided_slice %16 {offsets = [3, 0], sizes = [1, 32], strides = [1, 1]} : vector<8x64xf32> to vector<1x32xf32>
      %21 = vector.extract_strided_slice %16 {offsets = [4, 0], sizes = [1, 16], strides = [1, 1]} : vector<8x64xf32> to vector<1x16xf32>
      %22 = vector.extract_strided_slice %16 {offsets = [5, 0], sizes = [1, 16], strides = [1, 1]} : vector<8x64xf32> to vector<1x16xf32>
      %23 = vector.extract_strided_slice %16 {offsets = [6, 0], sizes = [1, 64], strides = [1, 1]} : vector<8x64xf32> to vector<1x64xf32>
      %c0_17 = arith.constant 0 : index
      %c0_18 = arith.constant 0 : index
      %24 = vector.load %arg11[%c0_17, %c0_18] : memref<16x4xf32, #tpu.memory_space<vmem>>, vector<16x4xf32>
      %cst_19 = arith.constant 3.906250e-03 : f32
      %25 = vector.broadcast %cst_19 : f32 to vector<16x4xf32>
      %26 = arith.mulf %24, %25 : vector<16x4xf32>
      %27 = arith.truncf %26 : vector<16x4xf32> to vector<16x4xbf16>
      %c0_20 = arith.constant 0 : index
      %c0_21 = arith.constant 0 : index
      %28 = vector.load %arg3[%c0_20, %c0_21] : memref<4x32xbf16, #tpu.memory_space<vmem>>, vector<4x32xbf16>
      %cst_22 = arith.constant dense<0.000000e+00> : vector<16x32xf32>
      %29 = tpu.matmul %27, %28, %cst_22 {dimension_numbers = #tpu.dot_dimension_numbers<[1], [0], [0], [1], [0, 0, 1, 1], [], []>} : vector<16x4xbf16>, vector<4x32xbf16>, vector<16x32xf32> -> vector<16x32xf32>
      %30 = arith.truncf %29 : vector<16x32xf32> to vector<16x32xbf16>
      %c0_23 = arith.constant 0 : index
      %c0_24 = arith.constant 0 : index
      %31 = vector.load %arg4[%c0_23, %c0_24] : memref<32x32xbf16, #tpu.memory_space<vmem>>, vector<32x32xbf16>
      %cst_25 = arith.constant dense<0.000000e+00> : vector<16x32xf32>
      %32 = tpu.matmul %30, %31, %cst_25 {dimension_numbers = #tpu.dot_dimension_numbers<[1], [0], [0], [1], [0, 0, 1, 1], [], []>} : vector<16x32xbf16>, vector<32x32xbf16>, vector<16x32xf32> -> vector<16x32xf32>
      %33 = vector.shape_cast %32 : vector<16x32xf32> to vector<2x8x32xf32>
      %cst_26 = arith.constant dense<0.000000e+00> : vector<2x32xf32>
      %34 = vector.multi_reduction <add>, %33, %cst_26 [1] : vector<2x8x32xf32> to vector<2x32xf32>
      %35 = vector.shape_cast %34 : vector<2x32xf32> to vector<2x1x32xf32>
      %cst_27 = arith.constant 8.000000e+00 : f32
      %36 = vector.broadcast %cst_27 : f32 to vector<2x1x32xf32>
      %37 = arith.divf %35, %36 : vector<2x1x32xf32>
      %38 = vector.broadcast %37 : vector<2x1x32xf32> to vector<2x8x32xf32>
      %39 = arith.subf %33, %38 : vector<2x8x32xf32>
      %40 = arith.mulf %39, %39 : vector<2x8x32xf32>
      %cst_28 = arith.constant dense<0.000000e+00> : vector<2x32xf32>
      %41 = vector.multi_reduction <add>, %40, %cst_28 [1] : vector<2x8x32xf32> to vector<2x32xf32>
      %42 = vector.shape_cast %41 : vector<2x32xf32> to vector<2x1x32xf32>
      %cst_29 = arith.constant 8.000000e+00 : f32
      %43 = vector.broadcast %cst_29 : f32 to vector<2x1x32xf32>
      %44 = arith.divf %42, %43 : vector<2x1x32xf32>
      %cst_30 = arith.constant 9.99999974E-6 : f32
      %45 = vector.broadcast %cst_30 : f32 to vector<2x1x32xf32>
      %46 = arith.addf %44, %45 : vector<2x1x32xf32>
      %47 = math.rsqrt %46 : vector<2x1x32xf32>
      %48 = vector.shape_cast %17 : vector<1x32xf32> to vector<1x1x32xf32>
      %49 = vector.broadcast %48 : vector<1x1x32xf32> to vector<2x1x32xf32>
      %50 = arith.mulf %47, %49 : vector<2x1x32xf32>
      %51 = vector.shape_cast %18 : vector<1x32xf32> to vector<1x1x32xf32>
      %52 = arith.mulf %37, %50 : vector<2x1x32xf32>
      %53 = vector.broadcast %51 : vector<1x1x32xf32> to vector<2x1x32xf32>
      %54 = arith.subf %53, %52 : vector<2x1x32xf32>
      %55 = vector.broadcast %50 : vector<2x1x32xf32> to vector<2x8x32xf32>
      %56 = arith.mulf %33, %55 : vector<2x8x32xf32>
      %57 = vector.broadcast %54 : vector<2x1x32xf32> to vector<2x8x32xf32>
      %58 = arith.addf %56, %57 : vector<2x8x32xf32>
      %59 = vector.shape_cast %58 : vector<2x8x32xf32> to vector<16x32xf32>
      %cst_31 = arith.constant 0.000000e+00 : f32
      %60 = vector.broadcast %cst_31 : f32 to vector<16x32xf32>
      %61 = arith.maximumf %59, %60 : vector<16x32xf32>
      %62 = arith.truncf %61 : vector<16x32xf32> to vector<16x32xbf16>
      %c0_32 = arith.constant 0 : index
      %c0_33 = arith.constant 0 : index
      %63 = vector.load %arg5[%c0_32, %c0_33] : memref<32x32xbf16, #tpu.memory_space<vmem>>, vector<32x32xbf16>
      %cst_34 = arith.constant dense<0.000000e+00> : vector<16x32xf32>
      %64 = tpu.matmul %62, %63, %cst_34 {dimension_numbers = #tpu.dot_dimension_numbers<[1], [0], [0], [1], [0, 0, 1, 1], [], []>} : vector<16x32xbf16>, vector<32x32xbf16>, vector<16x32xf32> -> vector<16x32xf32>
      %65 = vector.shape_cast %64 : vector<16x32xf32> to vector<2x8x32xf32>
      %cst_35 = arith.constant dense<0.000000e+00> : vector<2x32xf32>
      %66 = vector.multi_reduction <add>, %65, %cst_35 [1] : vector<2x8x32xf32> to vector<2x32xf32>
      %67 = vector.shape_cast %66 : vector<2x32xf32> to vector<2x1x32xf32>
      %cst_36 = arith.constant 8.000000e+00 : f32
      %68 = vector.broadcast %cst_36 : f32 to vector<2x1x32xf32>
      %69 = arith.divf %67, %68 : vector<2x1x32xf32>
      %70 = vector.broadcast %69 : vector<2x1x32xf32> to vector<2x8x32xf32>
      %71 = arith.subf %65, %70 : vector<2x8x32xf32>
      %72 = arith.mulf %71, %71 : vector<2x8x32xf32>
      %cst_37 = arith.constant dense<0.000000e+00> : vector<2x32xf32>
      %73 = vector.multi_reduction <add>, %72, %cst_37 [1] : vector<2x8x32xf32> to vector<2x32xf32>
      %74 = vector.shape_cast %73 : vector<2x32xf32> to vector<2x1x32xf32>
      %cst_38 = arith.constant 8.000000e+00 : f32
      %75 = vector.broadcast %cst_38 : f32 to vector<2x1x32xf32>
      %76 = arith.divf %74, %75 : vector<2x1x32xf32>
      %cst_39 = arith.constant 9.99999974E-6 : f32
      %77 = vector.broadcast %cst_39 : f32 to vector<2x1x32xf32>
      %78 = arith.addf %76, %77 : vector<2x1x32xf32>
      %79 = math.rsqrt %78 : vector<2x1x32xf32>
      %80 = vector.shape_cast %19 : vector<1x32xf32> to vector<1x1x32xf32>
      %81 = vector.broadcast %80 : vector<1x1x32xf32> to vector<2x1x32xf32>
      %82 = arith.mulf %79, %81 : vector<2x1x32xf32>
      %83 = vector.shape_cast %20 : vector<1x32xf32> to vector<1x1x32xf32>
      %84 = arith.mulf %69, %82 : vector<2x1x32xf32>
      %85 = vector.broadcast %83 : vector<1x1x32xf32> to vector<2x1x32xf32>
      %86 = arith.subf %85, %84 : vector<2x1x32xf32>
      %87 = vector.broadcast %82 : vector<2x1x32xf32> to vector<2x8x32xf32>
      %88 = arith.mulf %65, %87 : vector<2x8x32xf32>
      %89 = vector.broadcast %86 : vector<2x1x32xf32> to vector<2x8x32xf32>
      %90 = arith.addf %88, %89 : vector<2x8x32xf32>
      %91 = vector.shape_cast %90 : vector<2x8x32xf32> to vector<16x32xf32>
      %cst_40 = arith.constant 0.000000e+00 : f32
      %92 = vector.broadcast %cst_40 : f32 to vector<16x32xf32>
      %93 = arith.maximumf %91, %92 : vector<16x32xf32>
      %94 = arith.truncf %93 : vector<16x32xf32> to vector<16x32xbf16>
      %c0_41 = arith.constant 0 : index
      %c0_42 = arith.constant 0 : index
      %95 = vector.load %arg6[%c0_41, %c0_42] : memref<32x64xbf16, #tpu.memory_space<vmem>>, vector<32x64xbf16>
      %cst_43 = arith.constant dense<0.000000e+00> : vector<16x64xf32>
      %96 = tpu.matmul %94, %95, %cst_43 {dimension_numbers = #tpu.dot_dimension_numbers<[1], [0], [0], [1], [0, 0, 1, 1], [], []>} : vector<16x32xbf16>, vector<32x64xbf16>, vector<16x64xf32> -> vector<16x64xf32>
      %97 = vector.shape_cast %96 : vector<16x64xf32> to vector<2x8x64xf32>
      %cst_44 = arith.constant dense<0.000000e+00> : vector<2x64xf32>
      %98 = vector.multi_reduction <add>, %97, %cst_44 [1] : vector<2x8x64xf32> to vector<2x64xf32>
      %99 = vector.shape_cast %98 : vector<2x64xf32> to vector<2x1x64xf32>
      %cst_45 = arith.constant 8.000000e+00 : f32
      %100 = vector.broadcast %cst_45 : f32 to vector<2x1x64xf32>
      %101 = arith.divf %99, %100 : vector<2x1x64xf32>
      %102 = vector.broadcast %101 : vector<2x1x64xf32> to vector<2x8x64xf32>
      %103 = arith.subf %97, %102 : vector<2x8x64xf32>
      %104 = arith.mulf %103, %103 : vector<2x8x64xf32>
      %cst_46 = arith.constant dense<0.000000e+00> : vector<2x64xf32>
      %105 = vector.multi_reduction <add>, %104, %cst_46 [1] : vector<2x8x64xf32> to vector<2x64xf32>
      %106 = vector.shape_cast %105 : vector<2x64xf32> to vector<2x1x64xf32>
      %cst_47 = arith.constant 8.000000e+00 : f32
      %107 = vector.broadcast %cst_47 : f32 to vector<2x1x64xf32>
      %108 = arith.divf %106, %107 : vector<2x1x64xf32>
      %cst_48 = arith.constant 9.99999974E-6 : f32
      %109 = vector.broadcast %cst_48 : f32 to vector<2x1x64xf32>
      %110 = arith.addf %108, %109 : vector<2x1x64xf32>
      %111 = math.rsqrt %110 : vector<2x1x64xf32>
      %112 = arith.mulf %101, %111 : vector<2x1x64xf32>
      %cst_49 = arith.constant 0.000000e+00 : f32
      %113 = vector.broadcast %cst_49 : f32 to vector<2x1x64xf32>
      %114 = arith.subf %113, %112 : vector<2x1x64xf32>
      %115 = vector.broadcast %111 : vector<2x1x64xf32> to vector<2x8x64xf32>
      %116 = arith.mulf %97, %115 : vector<2x8x64xf32>
      %117 = vector.broadcast %114 : vector<2x1x64xf32> to vector<2x8x64xf32>
      %118 = arith.addf %116, %117 : vector<2x8x64xf32>
      %119 = vector.shape_cast %118 : vector<2x8x64xf32> to vector<16x64xf32>
      %120 = arith.truncf %119 : vector<16x64xf32> to vector<16x64xbf16>
      %c0_50 = arith.constant 0 : index
      %c0_51 = arith.constant 0 : index
      %121 = vector.load %arg7[%c0_50, %c0_51] : memref<64x16xbf16, #tpu.memory_space<vmem>>, vector<64x16xbf16>
      %cst_52 = arith.constant dense<0.000000e+00> : vector<16x16xf32>
      %122 = tpu.matmul %120, %121, %cst_52 {dimension_numbers = #tpu.dot_dimension_numbers<[1], [0], [0], [1], [0, 0, 1, 1], [], []>} : vector<16x64xbf16>, vector<64x16xbf16>, vector<16x16xf32> -> vector<16x16xf32>
      %123 = vector.shape_cast %122 : vector<16x16xf32> to vector<2x8x16xf32>
      %cst_53 = arith.constant dense<0.000000e+00> : vector<2x16xf32>
      %124 = vector.multi_reduction <add>, %123, %cst_53 [1] : vector<2x8x16xf32> to vector<2x16xf32>
      %125 = vector.shape_cast %124 : vector<2x16xf32> to vector<2x1x16xf32>
      %cst_54 = arith.constant 8.000000e+00 : f32
      %126 = vector.broadcast %cst_54 : f32 to vector<2x1x16xf32>
      %127 = arith.divf %125, %126 : vector<2x1x16xf32>
      %128 = vector.broadcast %127 : vector<2x1x16xf32> to vector<2x8x16xf32>
      %129 = arith.subf %123, %128 : vector<2x8x16xf32>
      %130 = arith.mulf %129, %129 : vector<2x8x16xf32>
      %cst_55 = arith.constant dense<0.000000e+00> : vector<2x16xf32>
      %131 = vector.multi_reduction <add>, %130, %cst_55 [1] : vector<2x8x16xf32> to vector<2x16xf32>
      %132 = vector.shape_cast %131 : vector<2x16xf32> to vector<2x1x16xf32>
      %cst_56 = arith.constant 8.000000e+00 : f32
      %133 = vector.broadcast %cst_56 : f32 to vector<2x1x16xf32>
      %134 = arith.divf %132, %133 : vector<2x1x16xf32>
      %cst_57 = arith.constant 9.99999974E-6 : f32
      %135 = vector.broadcast %cst_57 : f32 to vector<2x1x16xf32>
      %136 = arith.addf %134, %135 : vector<2x1x16xf32>
      %137 = math.rsqrt %136 : vector<2x1x16xf32>
      %138 = vector.shape_cast %21 : vector<1x16xf32> to vector<1x1x16xf32>
      %139 = vector.broadcast %138 : vector<1x1x16xf32> to vector<2x1x16xf32>
      %140 = arith.mulf %137, %139 : vector<2x1x16xf32>
      %141 = vector.shape_cast %22 : vector<1x16xf32> to vector<1x1x16xf32>
      %142 = arith.mulf %127, %140 : vector<2x1x16xf32>
      %143 = vector.broadcast %141 : vector<1x1x16xf32> to vector<2x1x16xf32>
      %144 = arith.subf %143, %142 : vector<2x1x16xf32>
      %145 = vector.broadcast %140 : vector<2x1x16xf32> to vector<2x8x16xf32>
      %146 = arith.mulf %123, %145 : vector<2x8x16xf32>
      %147 = vector.broadcast %144 : vector<2x1x16xf32> to vector<2x8x16xf32>
      %148 = arith.addf %146, %147 : vector<2x8x16xf32>
      %149 = vector.shape_cast %148 : vector<2x8x16xf32> to vector<16x16xf32>
      %cst_58 = arith.constant 0.000000e+00 : f32
      %150 = vector.broadcast %cst_58 : f32 to vector<16x16xf32>
      %151 = arith.maximumf %149, %150 : vector<16x16xf32>
      %152 = arith.truncf %151 : vector<16x16xf32> to vector<16x16xbf16>
      %c0_59 = arith.constant 0 : index
      %c0_60 = arith.constant 0 : index
      %153 = vector.load %arg8[%c0_59, %c0_60] : memref<16x64xbf16, #tpu.memory_space<vmem>>, vector<16x64xbf16>
      %cst_61 = arith.constant dense<0.000000e+00> : vector<16x64xf32>
      %154 = tpu.matmul %152, %153, %cst_61 {dimension_numbers = #tpu.dot_dimension_numbers<[1], [0], [0], [1], [0, 0, 1, 1], [], []>} : vector<16x16xbf16>, vector<16x64xbf16>, vector<16x64xf32> -> vector<16x64xf32>
      %155 = vector.broadcast %23 : vector<1x64xf32> to vector<16x64xf32>
      %156 = arith.addf %154, %155 : vector<16x64xf32>
      %c0_62 = arith.constant 0 : index
      %c0_63 = arith.constant 0 : index
      %157 = vector.load %arg10[%c0_62, %c0_63] : memref<16x128xf32, #tpu.memory_space<vmem>>, vector<16x64xf32>
      tpu.vector_store %arg10[%c0_62, %c0_63], %119 {strides = array<i32>} : memref<16x128xf32, #tpu.memory_space<vmem>>, vector<16x64xf32>,
      %c0_64 = arith.constant 0 : index
      %c64 = arith.constant 64 : index
      %158 = vector.load %arg10[%c0_64, %c64] : memref<16x128xf32, #tpu.memory_space<vmem>>, vector<16x64xf32>
      tpu.vector_store %arg10[%c0_64, %c64], %156 {strides = array<i32>} : memref<16x128xf32, #tpu.memory_space<vmem>>, vector<16x64xf32>,
    } else {
    }
    return
  }
  func.func @transform_0(%arg0: i32) -> (i32, i32, i32) {
    %c0_i32 = arith.constant 0 : i32
    %c0_i32_0 = arith.constant 0 : i32
    %c0_i32_1 = arith.constant 0 : i32
    return %c0_i32, %c0_i32_0, %arg0 : i32, i32, i32
  }
  func.func @transform_1(%arg0: i32) -> (i32, i32, i32) {
    %c0_i32 = arith.constant 0 : i32
    %c0_i32_0 = arith.constant 0 : i32
    %c0_i32_1 = arith.constant 0 : i32
    return %c0_i32, %c0_i32_0, %arg0 : i32, i32, i32
  }
  func.func @transform_2(%arg0: i32) -> (i32, i32) {
    %c0_i32 = arith.constant 0 : i32
    %c0_i32_0 = arith.constant 0 : i32
    %c0_i32_1 = arith.constant 0 : i32
    return %c0_i32, %c0_i32_0 : i32, i32
  }
  func.func @transform_3(%arg0: i32) -> (i32, i32) {
    %c0_i32 = arith.constant 0 : i32
    %c0_i32_0 = arith.constant 0 : i32
    %c0_i32_1 = arith.constant 0 : i32
    return %c0_i32, %c0_i32_0 : i32, i32
  }
  func.func @transform_4(%arg0: i32) -> (i32, i32) {
    %c0_i32 = arith.constant 0 : i32
    %c0_i32_0 = arith.constant 0 : i32
    %c0_i32_1 = arith.constant 0 : i32
    return %c0_i32, %c0_i32_0 : i32, i32
  }
  func.func @transform_5(%arg0: i32) -> (i32, i32) {
    %c0_i32 = arith.constant 0 : i32
    %c0_i32_0 = arith.constant 0 : i32
    %c0_i32_1 = arith.constant 0 : i32
    return %c0_i32, %c0_i32_0 : i32, i32
  }
  func.func @transform_6(%arg0: i32) -> (i32, i32) {
    %c0_i32 = arith.constant 0 : i32
    %c0_i32_0 = arith.constant 0 : i32
    %c0_i32_1 = arith.constant 0 : i32
    return %c0_i32, %c0_i32_0 : i32, i32
  }
  func.func @transform_7(%arg0: i32) -> (i32, i32) {
    %c0_i32 = arith.constant 0 : i32
    %c0_i32_0 = arith.constant 0 : i32
    %c0_i32_1 = arith.constant 0 : i32
    return %c0_i32, %c0_i32_0 : i32, i32
  }
  func.func @transform_8(%arg0: i32) -> (i32, i32) {
    %c0_i32 = arith.constant 0 : i32
    %c0_i32_0 = arith.constant 0 : i32
    %c0_i32_1 = arith.constant 0 : i32
    return %c0_i32, %c0_i32_0 : i32, i32
  }
  func.func @transform_9(%arg0: i32) -> (i32, i32) {
    %c0_i32 = arith.constant 0 : i32
    %c0_i32_0 = arith.constant 0 : i32
    %c0_i32_1 = arith.constant 0 : i32
    return %c0_i32, %c0_i32_0 : i32, i32
  }
}

</mosaic_0001>

<bundles_post_ra>
// kernel: simsiam_forward.1
= control target key start
LH: loop header
LB: loop body
LE: loop exit
PB: predicated region body
PF: predicated region fallthrough
CT: control target
= control target key end

     0   :  { %s1610_s30 = smov 0   ;;  %s1612_s10 = smov 0   ;;  %s1846_s0 = inlined_call_operand.vmem [shape: f32[8,4,256], index: 0, kind: input, shape index: {}]   ;;  %s1847_s1 = inlined_call_operand.vmem [shape: f32[8,4,256], index: 1, kind: input, shape index: {}]   ;;  %s1848_s2 = inlined_call_operand.vmem [shape: bf16[4,32], index: 2, kind: input, shape index: {}]   ;;  %s1849_s3 = inlined_call_operand.vmem [shape: bf16[32,32], index: 3, kind: input, shape index: {}]   ;;  %s1850_s4 = inlined_call_operand.vmem [shape: bf16[32,32], index: 4, kind: input, shape index: {}]   ;;  %s1851_s5 = inlined_call_operand.vmem [shape: bf16[32,64], index: 5, kind: input, shape index: {}]   ;;  %s1852_s6 = inlined_call_operand.vmem [shape: bf16[64,16], index: 6, kind: input, shape index: {}]   ;;  %s1853_s7 = inlined_call_operand.vmem [shape: bf16[16,64], index: 7, kind: input, shape index: {}]   ;;  %s1854_s8 = inlined_call_operand.vmem [shape: f32[8,64], index: 8, kind: input, shape index: {}]   ;;  %s1855_s9 = inlined_call_operand.vmem [shape: f32[16,128], index: 9, kind: output, shape index: {}]  }
   0x1   :  { %s1614_s11 = smov 0  }
   0x2 LB: > { %s1380_s12 = sadd.s32 4294967295, %s1554_s11   ;;  %s1627_s13 = sadd.s32 1, %s1554_s11   ;;  %s1554_s11 = sphi %s1614_s11, %s1859_s11   ;;  %s1550_s10 = sphi %s1612_s10, %s1858_s10   ;;  %s1546_s30 = sphi %s1610_s30, %s1857_s30  }
   0x3   : > { %s23_s14 = ssub.s32 %s1554_s11, %s1627_s13  ;;  %s26_s15 = sadd.s32 1, %s1550_s10 }
   0x4   : > { %p24_p0 = scmp.eq.s32.totalorder %s23_s14, 0  ;;  %p33_p1 = scmp.ne.s32.totalorder %s1550_s10, %s1546_s30 }
   0x5   : > { %p34_p2 = scmp.eq.s32.totalorder %s1554_s11, 0  ;;  %p1382_p4 = scmp.ge.s32.totalorder %s1554_s11, 2 }
   0x6   : > { %s1636_s16 = scalar_select %p24_p0, %s1550_s10, %s26_s15  }
   0x7   : > { %p1638_p3 = por %p34_p2, %p33_p1  ;;  %274 = sbr.rel (%p1382_p4) target bundleno = 30 (0x1e), region = 44 }
   0xc   : > { %277 = sbr.rel (!%p1638_p3) target bundleno = 21 (0x15), region = 48  ;;  %s279_s18 = sand.u32 (%p1638_p3), 1, %s1550_s10  }
   0xd   : > { %s1384_s19 = sshll.u32 (%p1638_p3), %s1554_s11, 2  ;;  %s1383_s20 = sshll.u32 (%p1638_p3), %s279_s18, 5 }
   0xe   : > { %s283_s23 = scalar_lea.vmem (%p1638_p3), %s1846_s0, %s1384_s19  ;;  %s281_s24 = scalar_lea.vmem (%p1638_p3), [#allocation3], %s1383_s20 }
   0xf   : > { %v300_v0 = vld [vmem:[%s283_s23] sm:$0xf] (%p1638_p3)  ;;  %v302_v1 = vld [vmem:[%s283_s23 + $0x8] sm:$0xf] (%p1638_p3)  ;;  %v304_v2 = vld [vmem:[%s283_s23 + $0x10] sm:$0xf] (%p1638_p3) }
  0x10   : > { %301 = vst [vmem:[%s281_s24] sm:$0xf] (%p1638_p3), %v300_v0  ;;  %303 = vst [vmem:[%s281_s24 + $0x4] sm:$0xf] (%p1638_p3), %v302_v1  ;;  %v306_v3 = vld [vmem:[%s283_s23 + $0x18] sm:$0xf] (%p1638_p3) }
  0x11   : > { %v308_v4 = vld [vmem:[%s283_s23 + $0x20] sm:$0xf]  ;;  %305 = vst [vmem:[%s281_s24 + $0x8] sm:$0xf] %v304_v2  ;;  %307 = vst [vmem:[%s281_s24 + $0xc] sm:$0xf] %v306_v3 }
  0x12   : > { %309 = vst [vmem:[%s281_s24 + $0x10] sm:$0xf] %v308_v4  ;;  %v310_v5 = vld [vmem:[%s283_s23 + $0x28] sm:$0xf]  ;;  %v312_v6 = vld [vmem:[%s283_s23 + $0x30] sm:$0xf] }
  0x13   : > { %v314_v7 = vld [vmem:[%s283_s23 + $0x38] sm:$0xf]  ;;  %311 = vst [vmem:[%s281_s24 + $0x14] sm:$0xf] %v310_v5  ;;  %313 = vst [vmem:[%s281_s24 + $0x18] sm:$0xf] %v312_v6 }
  0x14   : > { %315 = vst [vmem:[%s281_s24 + $0x1c] sm:$0xf] %v314_v7 }
  0x15 PF: > { %355 = sbr.rel (!%p1638_p3) target bundleno = 30 (0x1e), region = 89  ;;  %s357_s25 = sand.u32 (%p1638_p3), 1, %s1550_s10  }
  0x16   : > { %s1386_s26 = sshll.u32 (%p1638_p3), %s1554_s11, 2  ;;  %s1385_s27 = sshll.u32 (%p1638_p3), %s357_s25, 5 }
  0x17   : > { %s361_s14 = scalar_lea.vmem (%p1638_p3), %s1847_s1, %s1386_s26  ;;  %s359_s15 = scalar_lea.vmem (%p1638_p3), [#allocation4], %s1385_s27 }
  0x18   : > { %v378_v8 = vld [vmem:[%s361_s14] sm:$0xf] (%p1638_p3)  ;;  %v380_v9 = vld [vmem:[%s361_s14 + $0x8] sm:$0xf] (%p1638_p3)  ;;  %v382_v10 = vld [vmem:[%s361_s14 + $0x10] sm:$0xf] (%p1638_p3) }
  0x19   : > { %379 = vst [vmem:[%s359_s15] sm:$0xf] (%p1638_p3), %v378_v8  ;;  %381 = vst [vmem:[%s359_s15 + $0x4] sm:$0xf] (%p1638_p3), %v380_v9  ;;  %v384_v11 = vld [vmem:[%s361_s14 + $0x18] sm:$0xf] (%p1638_p3) }
  0x1a   : > { %v386_v12 = vld [vmem:[%s361_s14 + $0x20] sm:$0xf]  ;;  %383 = vst [vmem:[%s359_s15 + $0x8] sm:$0xf] %v382_v10  ;;  %385 = vst [vmem:[%s359_s15 + $0xc] sm:$0xf] %v384_v11 }
  0x1b   : > { %387 = vst [vmem:[%s359_s15 + $0x10] sm:$0xf] %v386_v12  ;;  %v388_v13 = vld [vmem:[%s361_s14 + $0x28] sm:$0xf]  ;;  %v390_v14 = vld [vmem:[%s361_s14 + $0x30] sm:$0xf] }
  0x1c   : > { %v392_v15 = vld [vmem:[%s361_s14 + $0x38] sm:$0xf]  ;;  %389 = vst [vmem:[%s359_s15 + $0x14] sm:$0xf] %v388_v13  ;;  %391 = vst [vmem:[%s359_s15 + $0x18] sm:$0xf] %v390_v14 }
  0x1d   : > { %393 = vst [vmem:[%s359_s15 + $0x1c] sm:$0xf] %v392_v15 }
  0x1e PF: > { %p1387_p5 = scmp.ge.s32.totalorder %s1554_s11, 1  ;;  %p432_p6 = scmp.lt.s32.totalorder %s1554_s11, 3 }
  0x20   : > { %p433_p7 = pnand %p1387_p5, %p432_p6 }
  0x21   : > { %s439_s17 = sand.u32 (!%p433_p7), 1, %s1546_s30   ;;  %p1390_p8 = scmp.ne.s32.totalorder (!%p433_p7), %s1380_s12, 0 }
  0x22   : > { %436 = sbr.rel (%p433_p7) target bundleno = 1790 (0x6fe), region = 130  ;;  %s1388_s18 = sshll.u32 (!%p433_p7), %s439_s17, 5 }
  0x23   : > { %s1660_s19 = scalar_lea.vmem (!%p433_p7), [#allocation3], %s1388_s18  ;;  %s1662_s20 = scalar_lea.vmem (!%p433_p7), [#allocation4], %s1388_s18 }
  0x27   : > { %484 = sbr.rel (%p1390_p8) target bundleno = 46 (0x2e), region = 142 }
  0x2c   : > { %vm485_vm0 = vcmask 31744   ;;  %v1556_v16 = vmov 0.0  }
  0x2d   : > { %486 = vst.msk [vmem:[#allocation2] sm:$0xff] %vm485_vm0, %v1556_v16  ;;  %487 = vst.msk [vmem:[#allocation2 + $0x8] sm:$0xff] %vm485_vm0, %v1556_v16 }
  0x2e PF: > { %vm497_vm1 = vcmask 1043456   ;;  %v583_v17 = vld [vmem:[%s1662_s20] sm:$0xf]  ;;  %v584_v21 = vld [vmem:[%s1662_s20 + $0x4] sm:$0xf]  ;;  %v530_v55 = vlaneseq  ;;  %vm564_vm2 = vcmask 1041409  }
  0x2f   : > { %v489_v18 = vld [vmem:[%s1660_s19] sm:$0xf]  ;;  %v591_v19 = vsel %vm497_vm1, %v583_v17, 0.0  ;;  %v490_v22 = vld [vmem:[%s1660_s19 + $0x4] sm:$0xf]  ;;  %v594_v23 = vsel %vm497_vm1, %v584_v21, 0.0 }
  0x30   : > { %v498_v20 = vsel %vm497_vm1, %v489_v18, 0.0  ;;  %592 = vadd.xlane.f32.xlu1 %v591_v19  ;;  %v501_v24 = vsel %vm497_vm1, %v490_v22, 0.0  ;;  %v585_v25 = vld [vmem:[%s1662_s20 + $0x8] sm:$0xf]  ;;  %v586_v29 = vld [vmem:[%s1662_s20 + $0xc] sm:$0xf] }
  0x31   : > { %499 = vadd.xlane.f32.xlu0 %v498_v20  ;;  %v491_v26 = vld [vmem:[%s1660_s19 + $0x8] sm:$0xf]  ;;  %v597_v27 = vsel %vm497_vm1, %v585_v25, 0.0  ;;  %v492_v30 = vld [vmem:[%s1660_s19 + $0xc] sm:$0xf]  ;;  %v600_v31 = vsel %vm497_vm1, %v586_v29, 0.0 }
  0x32   : > { %v504_v28 = vsel %vm497_vm1, %v491_v26, 0.0  ;;  %v507_v32 = vsel %vm497_vm1, %v492_v30, 0.0  ;;  %v587_v33 = vld [vmem:[%s1662_s20 + $0x10] sm:$0xf]  ;;  %v588_v37 = vld [vmem:[%s1662_s20 + $0x14] sm:$0xf] }
  0x33   : > { %v493_v34 = vld [vmem:[%s1660_s19 + $0x10] sm:$0xf]  ;;  %v603_v35 = vsel %vm497_vm1, %v587_v33, 0.0  ;;  %v494_v38 = vld [vmem:[%s1660_s19 + $0x14] sm:$0xf]  ;;  %v606_v39 = vsel %vm497_vm1, %v588_v37, 0.0 }
  0x34   : > { %595 = vadd.xlane.f32.xlu1 %v594_v23  ;;  %v510_v36 = vsel %vm497_vm1, %v493_v34, 0.0  ;;  %v513_v40 = vsel %vm497_vm1, %v494_v38, 0.0  ;;  %v589_v41 = vld [vmem:[%s1662_s20 + $0x18] sm:$0xf]  ;;  %v590_v45 = vld [vmem:[%s1662_s20 + $0x1c] sm:$0xf] }
  0x35   : > { %502 = vadd.xlane.f32.xlu0 %v501_v24  ;;  %v495_v42 = vld [vmem:[%s1660_s19 + $0x18] sm:$0xf]  ;;  %v609_v43 = vsel %vm497_vm1, %v589_v41, 0.0  ;;  %v496_v46 = vld [vmem:[%s1660_s19 + $0x1c] sm:$0xf]  ;;  %v612_v47 = vsel %vm497_vm1, %v590_v45, 0.0 }
  0x36   : > { %v516_v44 = vsel %vm497_vm1, %v495_v42, 0.0  ;;  %v519_v48 = vsel %vm497_vm1, %v496_v46, 0.0  ;;  %v531_v58 = vand.u32 127, %v530_v55  ;;  %v1698_v59 = vshrl.u32 %v530_v55, 7  ;;  %v582_v29 = vld [vmem:[#allocation2 + $0x8] sm:$0xff]  ;;  %p1391_p9 = scmp.ne.s32.totalorder %s1380_s12, 1 }
  0x37   : > { %vm566_vm3 = vcmask 1042434   ;;  %vm568_vm4 = vcmask 1043459   ;;  %vm570_vm5 = vcmask 1044484   ;;  %vm572_vm6 = vcmask 1045509   ;;  %s1559_s14 = smov (!%p1391_p9), 64  }
  0x38   : > { %598 = vadd.xlane.f32.xlu1 %v597_v27  ;;  %v534_v62 = vsub.s32 %v531_v58, %v1698_v59  ;;  %vm574_vm7 = vcmask 1046534   ;;  %vm576_vm8 = vcmask 1047559   ;;  %vm580_vm9 = vcmask 31744  }
  0x39   : > { %505 = vadd.xlane.f32.xlu0 %v504_v28 }
  0x3c   : > { %601 = vadd.xlane.f32.xlu1 %v600_v31  ;;  %v488_v31 = vld [vmem:[#allocation2] sm:$0xff] }
  0x3d   : > { %508 = vadd.xlane.f32.xlu0 %v507_v32 }
  0x40   : > { %604 = vadd.xlane.f32.xlu1 %v603_v35 }
  0x41   : > { %511 = vadd.xlane.f32.xlu0 %v510_v36 }
  0x44   : > { %607 = vadd.xlane.f32.xlu1 %v606_v39 }
  0x45   : > { %514 = vadd.xlane.f32.xlu0 %v513_v40 }
  0x48   : > { %610 = vadd.xlane.f32.xlu1 %v609_v43 }
  0x49   : > { %517 = vadd.xlane.f32.xlu0 %v516_v44 }
  0x4c   : > { %613 = vadd.xlane.f32.xlu1 %v612_v47 }
  0x4d   : > { %520 = vadd.xlane.f32.xlu0 %v519_v48 }
  0xb9   : > { %v593_v49 = vpop.xlane.xlu1 %592 }
  0xba   : > { %v500_v50 = vpop.xlane.xlu0 %499  ;;  %v626_v5 = vrot.slane %v593_v49, %v534_v62 }
  0xbb   : > { %v535_v6 = vrot.slane %v500_v50, %v534_v62 }
  0xbd   : > { %v596_v51 = vpop.xlane.xlu1 %595 }
  0xbe   : > { %v503_v52 = vpop.xlane.xlu0 %502  ;;  %v630_v1 = vrot.slane %v596_v51, %v534_v62 }
  0xbf   : > { %v539_v2 = vrot.slane %v503_v52, %v534_v62 }
  0xc0   : > { %v655_v13 = vsel %vm564_vm2, %v630_v1, %v626_v5 }
  0xc1   : > { %v599_v53 = vpop.xlane.xlu1 %598  ;;  %v565_v14 = vsel %vm564_vm2, %v539_v2, %v535_v6 }
  0xc2   : > { %v506_v54 = vpop.xlane.xlu0 %505  ;;  %v634_v3 = vrot.slane %v599_v53, %v534_v62 }
  0xc3   : > { %v543_v4 = vrot.slane %v506_v54, %v534_v62 }
  0xc4   : > { %v656_v17 = vsel %vm566_vm3, %v634_v3, %v655_v13 }
  0xc5   : > { %v602_v56 = vpop.xlane.xlu1 %601  ;;  %v567_v18 = vsel %vm566_vm3, %v543_v4, %v565_v14 }
  0xc6   : > { %v509_v57 = vpop.xlane.xlu0 %508  ;;  %v638_v7 = vrot.slane %v602_v56, %v534_v62 }
  0xc7   : > { %v547_v8 = vrot.slane %v509_v57, %v534_v62 }
  0xc8   : > { %v657_v21 = vsel %vm568_vm4, %v638_v7, %v656_v17 }
  0xc9   : > { %v605_v60 = vpop.xlane.xlu1 %604  ;;  %v569_v22 = vsel %vm568_vm4, %v547_v8, %v567_v18 }
  0xca   : > { %v512_v61 = vpop.xlane.xlu0 %511  ;;  %v642_v9 = vrot.slane %v605_v60, %v534_v62 }
  0xcb   : > { %v551_v10 = vrot.slane %v512_v61, %v534_v62 }
  0xcc   : > { %v658_v23 = vsel %vm570_vm5, %v642_v9, %v657_v21 }
  0xcd   : > { %v608_v63 = vpop.xlane.xlu1 %607  ;;  %v571_v24 = vsel %vm570_vm5, %v551_v10, %v569_v22 }
  0xce   : > { %v515_v0 = vpop.xlane.xlu0 %514  ;;  %v646_v15 = vrot.slane %v608_v63, %v534_v62 }
  0xcf   : > { %v555_v16 = vrot.slane %v515_v0, %v534_v62 }
  0xd0   : > { %v659_v27 = vsel %vm572_vm6, %v646_v15, %v658_v23 }
  0xd1   : > { %v611_v11 = vpop.xlane.xlu1 %610  ;;  %v573_v28 = vsel %vm572_vm6, %v555_v16, %v571_v24 }
  0xd2   : > { %v518_v12 = vpop.xlane.xlu0 %517  ;;  %v650_v19 = vrot.slane %v611_v11, %v534_v62 }
  0xd3   : > { %v559_v20 = vrot.slane %v518_v12, %v534_v62 }
  0xd4   : > { %v660_v33 = vsel %vm574_vm7, %v650_v19, %v659_v27 }
  0xd5   : > { %v614_v25 = vpop.xlane.xlu1 %613  ;;  %v575_v34 = vsel %vm574_vm7, %v559_v20, %v573_v28 }
  0xd6   : > { %v521_v26 = vpop.xlane.xlu0 %520  ;;  %v654_v30 = vrot.slane %v614_v25, %v534_v62 }
  0xd7   : > { %v563_v32 = vrot.slane %v521_v26, %v534_v62 }
  0xd8   : > { %v661_v35 = vsel %vm576_vm8, %v654_v30, %v660_v33  ;;  %668 = sbr.rel (%p1391_p9) target bundleno = 1790 (0x6fe), region = 146 }
  0xd9   : > { %v577_v36 = vsel %vm576_vm8, %v563_v32, %v575_v34  ;;  %v663_v37 = vadd.f32 %v661_v35, %v582_v29 }
  0xda   : > { %v579_v38 = vadd.f32 %v577_v36, %v488_v31 }
  0xdb   : > { %664 = vst.msk [vmem:[#allocation2 + $0x8] sm:$0xff] %vm580_vm9, %v663_v37 }
  0xdc   : > { %581 = vst.msk [vmem:[#allocation2] sm:$0xff] %vm580_vm9, %v579_v38 }
  0xdd   : > { %v675_v39 = vld [vmem:[%s1848_s2] sm:$0x3]  ;;  %vm679_vm10 = vcmask 1041408   ;;  %v1557_v41 = vmov 0.0   ;;  %vm1558_vm11 = vmmov 0   ;;  %v1505_v47 = vld [vmem:[%s1849_s3 + $0x8] sm:$0xff]  }
  0xde   : > { %1429 = vmatprep.subr.bf16.mxu0 %v1557_v41  ;;  %v681_v42 = vsel %vm679_vm10, %v675_v39, 0  ;;  %1431 = vmatprep.mubr.msk.bf16.mxu0 %vm1558_vm11, %v1557_v41  ;;  %v1506_v48 = vld [vmem:[%s1849_s3] sm:$0xff]   ;;  %vm741_vm12 = vcmask 261120   ;;  %v1507_v54 = vld [vmem:[%s1850_s4 + $0x8] sm:$0xff]   ;;  %v841_v39 = vsub.s32 0, %v1698_v59  ;;  %vm1057_vm13 = vcmask 523264  }
  0xdf   : > { %1430 = vmatpush3.bf16.msra.mxu0 %v681_v42  ;;  %1435 = vmatprep.subr.bf16.mxu1 %v1557_v41  ;;  %v1508_v55 = vld [vmem:[%s1850_s4] sm:$0xff]   ;;  %vm1183_vm14 = vcmask 130048   ;;  %vm1325_vm15 = vcmask 1048064  }
  0xe0   : > { %1439 = vmatprep.mubr.msk.bf16.mxu1 %vm1558_vm11, %v1557_v41  ;;  %1443 = vmatprep.subr.bf16.mxu0 %v1557_v41  ;;  %v1754_v35 = vld [vmem:[%s1854_s8] sm:$0xff] }
  0xe1   : > { %1436 = vmatpush3.bf16.msra.mxu1 %v1505_v47 }
  0xe2   : > { %v671_v43 = vld [vmem:[#allocation2 + $0x8] sm:$0xff]  ;;  %1437 = vmatprep.subr.bf16.mxu1 %v1557_v41 }
  0xe3   : > { %v670_v40 = vld [vmem:[#allocation2] sm:$0xff]  ;;  %v673_v45 = vmul.f32 0.00390625, %v671_v43  ;;  %v851_v43 = vsub.s32 1, %v1698_v59 }
  0xe4   : > { %v672_v44 = vmul.f32 0.00390625, %v670_v40 }
  0xe5   : > { %1438 = vmatpush3.bf16.msra.mxu1 %v1506_v48 }
  0xe6   : > { %v674_v46 = vpack.c.bf16 %v673_v45, %v672_v44  ;;  %1451 = vmatprep.subr.bf16.mxu1 %v1557_v41 }
  0xe8   : > { %1432 = vmatmul.mubr.msk.bf16.vlgmr.msra.gmra.mxu0 %vm580_vm9, %v674_v46 }
  0xe9   : > { %1447 = vmatprep.mubr.msk.bf16.mxu0 %vm1558_vm11, %v1557_v41  ;;  %1444 = vmatpush3.bf16.msra.mxu0 %v1507_v54 }
  0xea   : > { %1445 = vmatprep.subr.bf16.mxu0 %v1557_v41 }
  0xed   : > { %1446 = vmatpush3.bf16.msra.mxu0 %v1508_v55 }
  0xee   : > { %1459 = vmatprep.subr.bf16.mxu0 %v1557_v41 }
 0x1a8   : > { %v717_v49 = vpop.f32.mrf.mxu0 }
 0x1aa   : > { %v1433_v50 = vpop.f32.mrf.mxu0 }
 0x1ac   : > { %v720_v51 = vpop.f32.mrf.mxu0 }
 0x1ad   : > { %v724_v52 = vpack.c.bf16 %v720_v51, %v717_v49 }
 0x1ae   : > { %v1434_v53 = vpop.f32.mrf.mxu0 }
 0x1af   : > { %1440 = vmatmul.mubr.msk.bf16.vlgmr.msra.gmra.mxu1 %vm741_vm12, %v724_v52 }
 0x1b0   : > { %1455 = vmatprep.mubr.msk.bf16.mxu1 %vm1558_vm11, %v1557_v41 }
 0x26f   : > { %v779_v56 = vpop.f32.mrf.mxu1 }
 0x270   : > { %v786_v57 = vsel %vm741_vm12, %v779_v56, 0.0 }
 0x271   : > { %v787_v58 = vrot.slane %v786_v57, 4  ;;  %v1441_v60 = vpop.f32.mrf.mxu1 }
 0x273   : > { %v788_v61 = vadd.f32 %v787_v58, %v786_v57  ;;  %v782_v62 = vpop.f32.mrf.mxu1 }
 0x274   : > { %v793_v63 = vsel %vm741_vm12, %v782_v62, 0.0 }
 0x275   : > { %v789_v0 = vrot.slane %v788_v61, 2  ;;  %v794_v1 = vrot.slane %v793_v63, 4  ;;  %v1442_v2 = vpop.f32.mrf.mxu1 }
 0x277   : > { %v790_v3 = vadd.f32 %v789_v0, %v788_v61  ;;  %v795_v4 = vadd.f32 %v794_v1, %v793_v63  ;;  %v1509_v63 = vld [vmem:[%s1851_s5 + $0x8] sm:$0xff]  }
 0x278   : > { %1452 = vmatpush3.bf16.msra.mxu1 %v1509_v63 }
 0x279   : > { %v791_v5 = vrot.slane %v790_v3, 1  ;;  %v796_v6 = vrot.slane %v795_v4, 2  ;;  %1453 = vmatprep.subr.bf16.mxu1 %v1557_v41 }
 0x27b   : > { %v792_v7 = vadd.f32 %v791_v5, %v790_v3  ;;  %v797_v8 = vadd.f32 %v796_v6, %v795_v4 }
 0x27d   : > { %v801_v9 = vmul.f32 0.125, %v792_v7  ;;  %v798_v10 = vrot.slane %v797_v8, 1 }
 0x27f   : > { %v803_v11 = vsub.f32 %v779_v56, %v801_v9  ;;  %v799_v12 = vadd.f32 %v798_v10, %v797_v8 }
 0x281   : > { %v805_v13 = vmul.f32 %v803_v11, %v803_v11  ;;  %v802_v14 = vmul.f32 0.125, %v799_v12 }
 0x283   : > { %v807_v15 = vsel %vm741_vm12, %v805_v13, 0.0  ;;  %v804_v16 = vsub.f32 %v782_v62, %v802_v14 }
 0x284   : > { %v808_v17 = vrot.slane %v807_v15, 4 }
 0x285   : > { %v806_v18 = vmul.f32 %v804_v16, %v804_v16 }
 0x286   : > { %v809_v19 = vadd.f32 %v808_v17, %v807_v15 }
 0x287   : > { %v814_v20 = vsel %vm741_vm12, %v806_v18, 0.0 }
 0x288   : > { %v810_v21 = vrot.slane %v809_v19, 2  ;;  %v815_v22 = vrot.slane %v814_v20, 4 }
 0x28a   : > { %v811_v23 = vadd.f32 %v810_v21, %v809_v19  ;;  %v816_v24 = vadd.f32 %v815_v22, %v814_v20 }
 0x28c   : > { %v812_v25 = vrot.slane %v811_v23, 1  ;;  %v817_v26 = vrot.slane %v816_v24, 2 }
 0x28e   : > { %v813_v27 = vadd.f32 %v812_v25, %v811_v23  ;;  %v818_v28 = vadd.f32 %v817_v26, %v816_v24 }
 0x290   : > { %v821_v29 = vmul.f32 0.125, %v813_v27  ;;  %v819_v30 = vrot.slane %v818_v28, 1 }
 0x292   : > { %v823_v31 = vadd.f32 1e-05, %v821_v29  ;;  %v820_v32 = vadd.f32 %v819_v30, %v818_v28 }
 0x294   : > { %1516 = vrsqrt.f32 %v823_v31  ;;  %v822_v33 = vmul.f32 0.125, %v820_v32 }
 0x296   : > { %v824_v34 = vadd.f32 1e-05, %v822_v33 }
 0x298   : > { %1518 = vrsqrt.f32 %v824_v34 }
 0x2a1   : > { %v1517_v36 = vpop.eup %1516 }
 0x2a2   : > { %v827_v37 = vmul.f32 %v1517_v36, %v1754_v35 }
 0x2a4   : > { %v829_v38 = vmul.f32 %v827_v37, %v801_v9  ;;  %v842_v46 = vrot.slane %v827_v37, %v841_v39 }
 0x2a5   : > { %v1519_v40 = vpop.eup %1518 }
 0x2a6   : > { %v833_v42 = vrot.slane %v829_v38, 7  ;;  %v828_v44 = vmul.f32 %v1519_v40, %v1754_v35  ;;  %v847_v51 = vmul.f32 %v842_v46, %v779_v56  ;;  %v1510_v56 = vld [vmem:[%s1851_s5] sm:$0xff]   ;;  %v976_v46 = vsub.s32 2, %v1698_v59 }
 0x2a7   : > { %1454 = vmatpush3.bf16.msra.mxu1 %v1510_v56 }
 0x2a8   : > { %v837_v45 = vsub.f32 %v1754_v35, %v833_v42  ;;  %v830_v47 = vmul.f32 %v828_v44, %v802_v14  ;;  %v846_v50 = vrot.slane %v828_v44, %v841_v39  ;;  %1471 = vmatprep.subr.bf16.mxu1 %v1557_v41 }
 0x2aa   : > { %v852_v48 = vrot.slane %v837_v45, %v851_v43  ;;  %v834_v49 = vrot.slane %v830_v47, 7  ;;  %v848_v54 = vmul.f32 %v846_v50, %v782_v62 }
 0x2ac   : > { %v838_v52 = vsub.f32 %v1754_v35, %v834_v49  ;;  %v857_v53 = vadd.f32 %v852_v48, %v847_v51  ;;  %v986_v49 = vsub.s32 3, %v1698_v59 }
 0x2ae   : > { %v856_v55 = vrot.slane %v838_v52, %v851_v43  ;;  %v859_v58 = vmax.f32 %v857_v53, 0.0 }
 0x2b0   : > { %v858_v57 = vadd.f32 %v856_v55, %v848_v54 }
 0x2b2   : > { %v860_v60 = vmax.f32 %v858_v57, 0.0 }
 0x2b4   : > { %v861_v61 = vpack.c.bf16 %v860_v60, %v859_v58 }
 0x2b6   : > { %1448 = vmatmul.mubr.msk.bf16.vlgmr.msra.gmra.mxu0 %vm741_vm12, %v861_v61 }
 0x2b7   : > { %1467 = vmatprep.mubr.msk.bf16.mxu0 %vm1558_vm11, %v1557_v41 }
 0x376   : > { %v915_v62 = vpop.f32.mrf.mxu0 }
 0x377   : > { %v922_v0 = vsel %vm741_vm12, %v915_v62, 0.0 }
 0x378   : > { %v923_v1 = vrot.slane %v922_v0, 4  ;;  %v1449_v2 = vpop.f32.mrf.mxu0 }
 0x37a   : > { %v924_v3 = vadd.f32 %v923_v1, %v922_v0  ;;  %v918_v4 = vpop.f32.mrf.mxu0 }
 0x37b   : > { %v929_v5 = vsel %vm741_vm12, %v918_v4, 0.0 }
 0x37c   : > { %v925_v6 = vrot.slane %v924_v3, 2  ;;  %v930_v7 = vrot.slane %v929_v5, 4  ;;  %v1450_v8 = vpop.f32.mrf.mxu0 }
 0x37e   : > { %v926_v9 = vadd.f32 %v925_v6, %v924_v3  ;;  %v931_v10 = vadd.f32 %v930_v7, %v929_v5  ;;  %v1511_v5 = vld [vmem:[%s1852_s6 + $0x18] sm:$0xff]   ;;  %v1514_v6 = vld [vmem:[%s1852_s6] sm:$0xff]  }
 0x37f   : > { %1460 = vmatpush3.bf16.msra.mxu0 %v1511_v5 }
 0x380   : > { %v927_v11 = vrot.slane %v926_v9, 1  ;;  %v932_v12 = vrot.slane %v931_v10, 2  ;;  %1461 = vmatprep.subr.bf16.mxu0 %v1557_v41 }
 0x382   : > { %v928_v13 = vadd.f32 %v927_v11, %v926_v9  ;;  %v933_v14 = vadd.f32 %v932_v12, %v931_v10 }
 0x384   : > { %v936_v15 = vmul.f32 0.125, %v928_v13  ;;  %v934_v16 = vrot.slane %v933_v14, 1 }
 0x386   : > { %v938_v17 = vsub.f32 %v915_v62, %v936_v15  ;;  %v935_v18 = vadd.f32 %v934_v16, %v933_v14 }
 0x388   : > { %v940_v19 = vmul.f32 %v938_v17, %v938_v17  ;;  %v937_v20 = vmul.f32 0.125, %v935_v18 }
 0x38a   : > { %v942_v21 = vsel %vm741_vm12, %v940_v19, 0.0  ;;  %v939_v22 = vsub.f32 %v918_v4, %v937_v20 }
 0x38b   : > { %v943_v23 = vrot.slane %v942_v21, 4 }
 0x38c   : > { %v941_v24 = vmul.f32 %v939_v22, %v939_v22 }
 0x38d   : > { %v944_v25 = vadd.f32 %v943_v23, %v942_v21 }
 0x38e   : > { %v949_v26 = vsel %vm741_vm12, %v941_v24, 0.0 }
 0x38f   : > { %v945_v27 = vrot.slane %v944_v25, 2  ;;  %v950_v28 = vrot.slane %v949_v26, 4 }
 0x391   : > { %v946_v29 = vadd.f32 %v945_v27, %v944_v25  ;;  %v951_v30 = vadd.f32 %v950_v28, %v949_v26 }
 0x393   : > { %v947_v31 = vrot.slane %v946_v29, 1  ;;  %v952_v32 = vrot.slane %v951_v30, 2 }
 0x395   : > { %v948_v33 = vadd.f32 %v947_v31, %v946_v29  ;;  %v953_v34 = vadd.f32 %v952_v32, %v951_v30 }
 0x397   : > { %v956_v36 = vmul.f32 0.125, %v948_v33  ;;  %v954_v37 = vrot.slane %v953_v34, 1 }
 0x399   : > { %v958_v38 = vadd.f32 1e-05, %v956_v36  ;;  %v955_v39 = vadd.f32 %v954_v37, %v953_v34 }
 0x39b   : > { %1520 = vrsqrt.f32 %v958_v38  ;;  %v957_v40 = vmul.f32 0.125, %v955_v39 }
 0x39d   : > { %v959_v42 = vadd.f32 1e-05, %v957_v40 }
 0x39f   : > { %1522 = vrsqrt.f32 %v959_v42 }
 0x3a8   : > { %v1521_v43 = vpop.eup %1520 }
 0x3a9   : > { %v962_v44 = vmul.f32 %v1521_v43, %v1754_v35 }
 0x3ab   : > { %v964_v45 = vmul.f32 %v962_v44, %v936_v15  ;;  %v977_v52 = vrot.slane %v962_v44, %v976_v46 }
 0x3ac   : > { %v1523_v47 = vpop.eup %1522 }
 0x3ad   : > { %v968_v48 = vrot.slane %v964_v45, 7  ;;  %v963_v50 = vmul.f32 %v1523_v47, %v1754_v35  ;;  %v982_v58 = vmul.f32 %v977_v52, %v915_v62  ;;  %v1512_v62 = vld [vmem:[%s1852_s6 + $0x10] sm:$0xff]  }
 0x3ae   : > { %1462 = vmatpush3.bf16.msra.mxu0 %v1512_v62 }
 0x3af   : > { %v972_v51 = vsub.f32 %v1754_v35, %v968_v48  ;;  %v965_v53 = vmul.f32 %v963_v50, %v937_v20  ;;  %v981_v57 = vrot.slane %v963_v50, %v976_v46  ;;  %1463 = vmatprep.subr.bf16.mxu0 %v1557_v41 }
 0x3b1   : > { %v987_v54 = vrot.slane %v972_v51, %v986_v49  ;;  %v969_v55 = vrot.slane %v965_v53, 7  ;;  %v983_v63 = vmul.f32 %v981_v57, %v918_v4  ;;  %v1513_v4 = vld [vmem:[%s1852_s6 + $0x8] sm:$0xff]  }
 0x3b2   : > { %1464 = vmatpush3.bf16.msra.mxu0 %v1513_v4 }
 0x3b3   : > { %v973_v60 = vsub.f32 %v1754_v35, %v969_v55  ;;  %v992_v61 = vadd.f32 %v987_v54, %v982_v58  ;;  %1465 = vmatprep.subr.bf16.mxu0 %v1557_v41 }
 0x3b5   : > { %v991_v56 = vrot.slane %v973_v60, %v986_v49  ;;  %v994_v1 = vmax.f32 %v992_v61, 0.0 }
 0x3b6   : > { %1466 = vmatpush3.bf16.msra.mxu0 %v1514_v6 }
 0x3b7   : > { %v993_v0 = vadd.f32 %v991_v56, %v983_v63  ;;  %v1515_v56 = vld [vmem:[%s1853_s7] sm:$0xff]  }
 0x3b9   : > { %v995_v2 = vmax.f32 %v993_v0, 0.0 }
 0x3bb   : > { %v996_v3 = vpack.c.bf16 %v995_v2, %v994_v1 }
 0x3bd   : > { %1456 = vmatmul.mubr.msk.bf16.vlgmr.msra.gmra.mxu1 %vm741_vm12, %v996_v3 }
 0x3be   : > { %1473 = vmatprep.mubr.msk.bf16.mxu1 %vm1558_vm11, %v1557_v41  ;;  %1472 = vmatpush3.bf16.msra.mxu1 %v1515_v56 }
 0x47d   : > { %v1050_v7 = vpop.f32.mrf.mxu1 }
 0x47e   : > { %v1058_v8 = vsel %vm1057_vm13, %v1050_v7, 0.0 }
 0x47f   : > { %v1059_v9 = vrot.slane %v1058_v8, 4  ;;  %v1457_v10 = vpop.f32.mrf.mxu1 }
 0x481   : > { %v1060_v11 = vadd.f32 %v1059_v9, %v1058_v8  ;;  %v1053_v12 = vpop.f32.mrf.mxu1 }
 0x482   : > { %v1065_v13 = vsel %vm1057_vm13, %v1053_v12, 0.0 }
 0x483   : > { %v1061_v14 = vrot.slane %v1060_v11, 2  ;;  %v1066_v15 = vrot.slane %v1065_v13, 4  ;;  %v1458_v16 = vpop.f32.mrf.mxu1 }
 0x485   : > { %v1062_v17 = vadd.f32 %v1061_v14, %v1060_v11  ;;  %v1067_v41 = vadd.f32 %v1066_v15, %v1065_v13 }
 0x487   : > { %v1063_v18 = vrot.slane %v1062_v17, 1  ;;  %v1068_v19 = vrot.slane %v1067_v41, 2 }
 0x489   : > { %v1064_v20 = vadd.f32 %v1063_v18, %v1062_v17  ;;  %v1069_v21 = vadd.f32 %v1068_v19, %v1067_v41 }
 0x48b   : > { %v1072_v22 = vmul.f32 0.125, %v1064_v20  ;;  %v1070_v23 = vrot.slane %v1069_v21, 1 }
 0x48d   : > { %v1074_v24 = vsub.f32 %v1050_v7, %v1072_v22  ;;  %v1071_v25 = vadd.f32 %v1070_v23, %v1069_v21 }
 0x48f   : > { %v1076_v26 = vmul.f32 %v1074_v24, %v1074_v24  ;;  %v1073_v27 = vmul.f32 0.125, %v1071_v25 }
 0x491   : > { %v1078_v28 = vsel %vm1057_vm13, %v1076_v26, 0.0  ;;  %v1075_v29 = vsub.f32 %v1053_v12, %v1073_v27 }
 0x492   : > { %v1079_v30 = vrot.slane %v1078_v28, 4 }
 0x493   : > { %v1077_v31 = vmul.f32 %v1075_v29, %v1075_v29 }
 0x494   : > { %v1080_v32 = vadd.f32 %v1079_v30, %v1078_v28 }
 0x495   : > { %v1085_v33 = vsel %vm1057_vm13, %v1077_v31, 0.0 }
 0x496   : > { %v1081_v34 = vrot.slane %v1080_v32, 2  ;;  %v1086_v36 = vrot.slane %v1085_v33, 4 }
 0x498   : > { %v1082_v37 = vadd.f32 %v1081_v34, %v1080_v32  ;;  %v1087_v38 = vadd.f32 %v1086_v36, %v1085_v33 }
 0x49a   : > { %v1083_v39 = vrot.slane %v1082_v37, 1  ;;  %v1088_v40 = vrot.slane %v1087_v38, 2 }
 0x49c   : > { %v1084_v42 = vadd.f32 %v1083_v39, %v1082_v37  ;;  %v1089_v43 = vadd.f32 %v1088_v40, %v1087_v38 }
 0x49e   : > { %v1092_v44 = vmul.f32 0.125, %v1084_v42  ;;  %v1090_v45 = vrot.slane %v1089_v43, 1 }
 0x4a0   : > { %v1094_v46 = vadd.f32 1e-05, %v1092_v44  ;;  %v1091_v47 = vadd.f32 %v1090_v45, %v1089_v43  ;;  %v1238_v45 = vsub.s32 4, %v1698_v59 }
 0x4a2   : > { %1524 = vrsqrt.f32 %v1094_v46  ;;  %v1093_v48 = vmul.f32 0.125, %v1091_v47 }
 0x4a4   : > { %v1095_v49 = vadd.f32 1e-05, %v1093_v48  ;;  %v1248_v48 = vsub.s32 5, %v1698_v59 }
 0x4a6   : > { %1526 = vrsqrt.f32 %v1095_v49 }
 0x4af   : > { %v1525_v50 = vpop.eup %1524 }
 0x4b0   : > { %v1098_v51 = vmul.f32 %v1525_v50, %v1072_v22  ;;  %v1102_v53 = vmul.f32 %v1525_v50, %v1050_v7 }
 0x4b2   : > { %v1100_v52 = vsub.f32 0.0, %v1098_v51 }
 0x4b3   : > { %v1527_v54 = vpop.eup %1526 }
 0x4b4   : > { %v1104_v55 = vadd.f32 %v1102_v53, %v1100_v52  ;;  %v1099_v57 = vmul.f32 %v1527_v54, %v1073_v27  ;;  %v1103_v60 = vmul.f32 %v1527_v54, %v1053_v12 }
 0x4b6   : > { %1315 = vst.msk [vmem:[%s1855_s9] sm:$0xff] %vm1057_vm13, %v1104_v55  ;;  %v1101_v58 = vsub.f32 0.0, %v1099_v57 }
 0x4b8   : > { %v1105_v61 = vadd.f32 %v1103_v60, %v1101_v58 }
 0x4ba   : > { %v1106_v63 = vpack.c.bf16 %v1105_v61, %v1104_v55  ;;  %1316 = vst.msk [vmem:[%s1855_s9 + $0x8] sm:$0xff] %vm1057_vm13, %v1105_v61 }
 0x4bc   : > { %1468 = vmatmul.mubr.msk.bf16.vlgmr.msra.gmra.mxu0 %vm1057_vm13, %v1106_v63 }
 0x57c   : > { %v1176_v0 = vpop.f32.mrf.mxu0 }
 0x57d   : > { %v1184_v1 = vsel %vm1183_vm14, %v1176_v0, 0.0 }
 0x57e   : > { %v1185_v2 = vrot.slane %v1184_v1, 4  ;;  %v1469_v3 = vpop.f32.mrf.mxu0 }
 0x580   : > { %v1186_v5 = vadd.f32 %v1185_v2, %v1184_v1  ;;  %v1179_v62 = vpop.f32.mrf.mxu0 }
 0x581   : > { %v1191_v4 = vsel %vm1183_vm14, %v1179_v62, 0.0 }
 0x582   : > { %v1187_v6 = vrot.slane %v1186_v5, 2  ;;  %v1192_v7 = vrot.slane %v1191_v4, 4  ;;  %v1470_v8 = vpop.f32.mrf.mxu0 }
 0x584   : > { %v1188_v9 = vadd.f32 %v1187_v6, %v1186_v5  ;;  %v1193_v10 = vadd.f32 %v1192_v7, %v1191_v4  ;;  %v1263_v5 = vsub.s32 6, %v1698_v59 }
 0x586   : > { %v1189_v11 = vrot.slane %v1188_v9, 1  ;;  %v1194_v12 = vrot.slane %v1193_v10, 2  ;;  %v1264_v4 = vrot.slane %v1754_v35, %v1263_v5 }
 0x588   : > { %v1190_v13 = vadd.f32 %v1189_v11, %v1188_v9  ;;  %v1195_v14 = vadd.f32 %v1194_v12, %v1193_v10 }
 0x58a   : > { %v1198_v15 = vmul.f32 0.125, %v1190_v13  ;;  %v1196_v16 = vrot.slane %v1195_v14, 1 }
 0x58c   : > { %v1200_v17 = vsub.f32 %v1176_v0, %v1198_v15  ;;  %v1197_v41 = vadd.f32 %v1196_v16, %v1195_v14 }
 0x58e   : > { %v1202_v18 = vmul.f32 %v1200_v17, %v1200_v17  ;;  %v1199_v19 = vmul.f32 0.125, %v1197_v41 }
 0x590   : > { %v1204_v20 = vsel %vm1183_vm14, %v1202_v18, 0.0  ;;  %v1201_v21 = vsub.f32 %v1179_v62, %v1199_v19 }
 0x591   : > { %v1205_v22 = vrot.slane %v1204_v20, 4 }
 0x592   : > { %v1203_v23 = vmul.f32 %v1201_v21, %v1201_v21 }
 0x593   : > { %v1206_v24 = vadd.f32 %v1205_v22, %v1204_v20 }
 0x594   : > { %v1211_v25 = vsel %vm1183_vm14, %v1203_v23, 0.0 }
 0x595   : > { %v1207_v26 = vrot.slane %v1206_v24, 2  ;;  %v1212_v27 = vrot.slane %v1211_v25, 4 }
 0x597   : > { %v1208_v28 = vadd.f32 %v1207_v26, %v1206_v24  ;;  %v1213_v29 = vadd.f32 %v1212_v27, %v1211_v25 }
 0x599   : > { %v1209_v30 = vrot.slane %v1208_v28, 1  ;;  %v1214_v31 = vrot.slane %v1213_v29, 2 }
 0x59b   : > { %v1210_v32 = vadd.f32 %v1209_v30, %v1208_v28  ;;  %v1215_v33 = vadd.f32 %v1214_v31, %v1213_v29 }
 0x59d   : > { %v1218_v34 = vmul.f32 0.125, %v1210_v32  ;;  %v1216_v36 = vrot.slane %v1215_v33, 1 }
 0x59f   : > { %v1220_v37 = vadd.f32 1e-05, %v1218_v34  ;;  %v1217_v38 = vadd.f32 %v1216_v36, %v1215_v33 }
 0x5a1   : > { %1528 = vrsqrt.f32 %v1220_v37  ;;  %v1219_v39 = vmul.f32 0.125, %v1217_v38 }
 0x5a3   : > { %v1221_v40 = vadd.f32 1e-05, %v1219_v39 }
 0x5a5   : > { %1530 = vrsqrt.f32 %v1221_v40 }
 0x5ae   : > { %v1529_v42 = vpop.eup %1528 }
 0x5af   : > { %v1224_v43 = vmul.f32 %v1529_v42, %v1754_v35 }
 0x5b1   : > { %v1226_v44 = vmul.f32 %v1224_v43, %v1198_v15  ;;  %v1239_v51 = vrot.slane %v1224_v43, %v1238_v45 }
 0x5b2   : > { %v1531_v46 = vpop.eup %1530 }
 0x5b3   : > { %v1230_v47 = vrot.slane %v1226_v44, 7  ;;  %v1225_v49 = vmul.f32 %v1531_v46, %v1754_v35  ;;  %v1244_v57 = vmul.f32 %v1239_v51, %v1176_v0 }
 0x5b5   : > { %v1234_v50 = vsub.f32 %v1754_v35, %v1230_v47  ;;  %v1227_v52 = vmul.f32 %v1225_v49, %v1199_v19  ;;  %v1243_v55 = vrot.slane %v1225_v49, %v1238_v45 }
 0x5b7   : > { %v1249_v53 = vrot.slane %v1234_v50, %v1248_v48  ;;  %v1231_v54 = vrot.slane %v1227_v52, 7  ;;  %v1245_v61 = vmul.f32 %v1243_v55, %v1179_v62 }
 0x5b9   : > { %v1235_v58 = vsub.f32 %v1754_v35, %v1231_v54  ;;  %v1254_v60 = vadd.f32 %v1249_v53, %v1244_v57 }
 0x5bb   : > { %v1253_v63 = vrot.slane %v1235_v58, %v1248_v48  ;;  %v1256_v1 = vmax.f32 %v1254_v60, 0.0 }
 0x5bd   : > { %v1255_v56 = vadd.f32 %v1253_v63, %v1245_v61 }
 0x5bf   : > { %v1257_v2 = vmax.f32 %v1255_v56, 0.0 }
 0x5c1   : > { %v1258_v3 = vpack.c.bf16 %v1257_v2, %v1256_v1 }
 0x5c3   : > { %1474 = vmatmul.mubr.msk.bf16.vlgmr.msra.gmra.mxu1 %vm1183_vm14, %v1258_v3 }
 0x683   : > { %v1308_v6 = vpop.f32.mrf.mxu1 }
 0x684   : > { %v1309_v7 = vadd.f32 %v1308_v6, %v1264_v4 }
 0x685   : > { %v1475_v8 = vpop.f32.mrf.mxu1 }
 0x686   : > { %1319 = vrot.lane.b32.xlu0 %v1309_v7, %s1559_s14 }
 0x687   : > { %v1311_v0 = vpop.f32.mrf.mxu1 }
 0x688   : > { %v1312_v9 = vadd.f32 %v1311_v0, %v1264_v4 }
 0x689   : > { %v1476_v10 = vpop.f32.mrf.mxu1 }
 0x68a   : > { %1321 = vrot.lane.b32.xlu0 %v1312_v9, %s1559_s14 }
 0x6f8   : > { %v1320_v62 = vpop.permute.xlu0 %1319 }
 0x6f9   : > { %1326 = vst.msk [vmem:[%s1855_s9] sm:$0xff] %vm1325_vm15, %v1320_v62 }
 0x6fc   : > { %v1322_v11 = vpop.permute.xlu0 %1321 }
 0x6fd   : > { %1327 = vst.msk [vmem:[%s1855_s9 + $0x8] sm:$0xff] %vm1325_vm15, %v1322_v11 }
 0x6fe PF: > { %p16_p10 = scmp.ge.s32.totalorder %s1627_s13, 4   ;;  %s1857_s30 = smov %s1550_s10 }
 0x6ff   : > { %s1858_s10 = smov %s1636_s16  ;;  %s1859_s11 = smov %s1627_s13 }
 0x700   :  { %18 = sbr.rel (!%p16_p10) target bundleno = 2 (0x2), region = 185 }

</bundles_post_ra>
